<compile_context>
chip_gen: v7x
topology: tpu7x:2x2x1
jax: 0.10.0
libtpu: 0.0.40
codegen_flags: <defaults>
</compile_context>

<pallas_src>
import functools

import jax
import jax.numpy as jnp
from jax.experimental import pallas as pl
from jax.experimental.pallas import tpu as pltpu


def _dice_sums_kernel(logits_ref, labels_ref, inter_ref, card_ref, *, hw, tile_hw):
    t = pl.program_id(1)

    # Spatial-tile axis is a reduction: init the per-batch accumulators at step 0.
    @pl.when(t == 0)
    def _():
        inter_ref[...] = jnp.zeros_like(inter_ref)
        card_ref[...] = jnp.zeros_like(card_ref)

    x = logits_ref[0].astype(jnp.float32)        # (C, tile_hw)  class=sublane, spatial=lane
    labels = labels_ref[0]                       # (1, tile_hw)  int32
    num_classes = x.shape[0]

    # Tail mask along the lane (spatial) axis for the ragged last tile.
    pos = jax.lax.broadcasted_iota(jnp.int32, (1, tile_hw), 1) + t * tile_hw
    valid = pos < hw                             # (1, tile_hw) bool
    # Scrub unspecified out-of-bounds values before max/exp so they cannot poison sums.
    x = jnp.where(valid, x, 0.0)

    # Numerically-stable softmax over the class (sublane) axis.
    m = jnp.max(x, axis=0, keepdims=True)        # (1, tile_hw)
    e = jnp.exp(x - m)                           # (C, tile_hw)
    denom = jnp.sum(e, axis=0, keepdims=True)    # (1, tile_hw)
    msk = valid.astype(jnp.float32)
    # One reciprocal + one fused broadcast multiply (mask folded in).
    probs = e * (pl.reciprocal(denom) * msk)     # masked softmax, (C, tile_hw)

    # One-hot of labels against the class (sublane) iota, gated by the tail mask.
    cls = jax.lax.broadcasted_iota(jnp.int32, (num_classes, tile_hw), 0)
    onehot = ((labels == cls) & valid).astype(jnp.float32)

    # Per-class partial sums over the spatial (lane) axis -> (C, 1), accumulate.
    inter_ref[...] += jnp.sum(probs * onehot, axis=1, keepdims=True).reshape(1, num_classes, 1)
    card_ref[...] += jnp.sum(probs + onehot, axis=1, keepdims=True).reshape(1, num_classes, 1)


@functools.partial(jax.jit, static_argnames=("smooth",))
def dice_loss(logits, true, *, smooth=1e-6):
    """Dice loss matching the PyTorch reference.

    Args:
      logits: [B, C, H, W] float array (f32 or bf16; cast to f32 in-kernel).
      true:   [B, H, W] integer class labels.
    Returns:
      scalar float32 loss.
    """
    B, C, H, W = logits.shape
    HW = H * W

    # Free views (NCHW is already contiguous in this layout): no transpose, no pad.
    x = logits.reshape(B, C, HW)
    labels = true.astype(jnp.int32).reshape(B, 1, HW)

    # Lane tile: largest multiple of 128 that keeps a double-buffered logits block
    # within ~8 MiB (safe headroom for v7x's smaller VMEM), capped at 8192 lanes.
    itemsize = jnp.dtype(logits.dtype).itemsize
    budget_bytes = 8 * 1024 * 1024
    max_lane = max(128, min(8192, (budget_bytes // (2 * C * itemsize)) // 128 * 128))
    tile_hw = HW if HW <= max_lane else max_lane
    num_t = pl.cdiv(HW, tile_hw)

    kernel = functools.partial(_dice_sums_kernel, hw=HW, tile_hw=tile_hw)

    inter_b, card_b = pl.pallas_call(
        kernel,
        out_shape=(
            jax.ShapeDtypeStruct((B, C, 1), jnp.float32),
            jax.ShapeDtypeStruct((B, C, 1), jnp.float32),
        ),
        grid_spec=pltpu.PrefetchScalarGridSpec(
            num_scalar_prefetch=0,
            grid=(B, num_t),
            in_specs=[
                pl.BlockSpec((1, C, tile_hw), lambda b, t: (b, 0, t)),
                pl.BlockSpec((1, 1, tile_hw), lambda b, t: (b, 0, t)),
            ],
            out_specs=[
                pl.BlockSpec((1, C, 1), lambda b, t: (b, 0, 0)),
                pl.BlockSpec((1, C, 1), lambda b, t: (b, 0, 0)),
            ],
        ),
        compiler_params=pltpu.CompilerParams(
            dimension_semantics=("parallel", "arbitrary"),
        ),
    )(x, labels)

    # Reduce the per-batch partials in the wrapper (keeps the batch axis parallel).
    inter = jnp.sum(inter_b[:, :, 0], axis=0)    # (C,)
    card = jnp.sum(card_b[:, :, 0], axis=0)      # (C,)
    dice = (2.0 * inter + smooth) / (card + smooth)
    return (1.0 - jnp.mean(dice)).astype(jnp.float32)


def _dice_loss_ref(logits, true, smooth=1e-6):
    """Pure-JAX reference (mirrors the PyTorch module)."""
    probs = jax.nn.softmax(logits.astype(jnp.float32), axis=1)          # [B,C,H,W]
    one_hot = jax.nn.one_hot(true, probs.shape[1], dtype=jnp.float32)   # [B,H,W,C]
    one_hot = jnp.transpose(one_hot, (0, 3, 1, 2))                      # [B,C,H,W]
    dims = (0, 2, 3)
    inter = jnp.sum(probs * one_hot, dims)
    card = jnp.sum(probs + one_hot, dims)
    dice = (2.0 * inter + smooth) / (card + smooth)
    return 1.0 - jnp.mean(dice)


if __name__ == "__main__":
    key = jax.random.PRNGKey(0)
    k1, k2 = jax.random.split(key)

    B, C, H, W = 2, 4, 16, 16
    logits = jax.random.normal(k1, (B, C, H, W), dtype=jnp.float32)
    true = jax.random.randint(k2, (B, H, W), 0, C, dtype=jnp.int32)

    loss = dice_loss(logits, true)
    loss = jax.block_until_ready(loss)

    ref = _dice_loss_ref(logits, true)
    assert jnp.allclose(loss, ref, atol=1e-5, rtol=1e-5), (loss, ref)

    print("KERNEL_OK")
</pallas_src>

<mosaic_0001>
module attributes {stable_mosaic.version = 11 : i64} {
  func.func @_dice_sums_kernel(%arg0: i32, %arg1: i32, %arg2: memref<1x4x256xf32, #tpu.memory_space<vmem>>, %arg3: memref<1x1x256xi32, #tpu.memory_space<vmem>>, %arg4: memref<1x4x1xf32, #tpu.memory_space<vmem>>, %arg5: memref<1x4x1xf32, #tpu.memory_space<vmem>>) attributes {dimension_semantics = [#tpu.dimension_semantics<parallel>, #tpu.dimension_semantics<arbitrary>], iteration_bounds = array<i64: 2, 1>, scalar_prefetch = 0 : i64, scratch_operands = 0 : i64, tpu.core_type = #tpu.core_type<tc>, window_params = [{transform_indices = @transform_0, window_bounds = array<i64: 1, 4, 256>}, {transform_indices = @transform_1, window_bounds = array<i64: 1, 1, 256>}, {transform_indices = @transform_2, window_bounds = array<i64: 1, 4, 1>}, {transform_indices = @transform_3, window_bounds = array<i64: 1, 4, 1>}]} {
    %c0_i32 = arith.constant 0 : i32
    %0 = arith.cmpi eq, %arg1, %c0_i32 : i32
    %1 = arith.extui %0 : i1 to i32
    %c0_i32_0 = arith.constant 0 : i32
    %2 = arith.cmpi ne, %1, %c0_i32_0 : i32
    scf.if %2 {
      %cst_23 = arith.constant 0.000000e+00 : f32
      %51 = vector.broadcast %cst_23 : f32 to vector<1x4x1xf32>
      %c0_24 = arith.constant 0 : index
      %c0_25 = arith.constant 0 : index
      %c0_26 = arith.constant 0 : index
      %52 = vector.load %arg4[%c0_24, %c0_25, %c0_26] : memref<1x4x1xf32, #tpu.memory_space<vmem>>, vector<1x4x1xf32>
      tpu.vector_store %arg4[%c0_24, %c0_25, %c0_26], %51 {strides = array<i32>} : memref<1x4x1xf32, #tpu.memory_space<vmem>>, vector<1x4x1xf32>,
      %cst_27 = arith.constant 0.000000e+00 : f32
      %53 = vector.broadcast %cst_27 : f32 to vector<1x4x1xf32>
      %c0_28 = arith.constant 0 : index
      %c0_29 = arith.constant 0 : index
      %c0_30 = arith.constant 0 : index
      %54 = vector.load %arg5[%c0_28, %c0_29, %c0_30] : memref<1x4x1xf32, #tpu.memory_space<vmem>>, vector<1x4x1xf32>
      tpu.vector_store %arg5[%c0_28, %c0_29, %c0_30], %53 {strides = array<i32>} : memref<1x4x1xf32, #tpu.memory_space<vmem>>, vector<1x4x1xf32>,
    } else {
    }
    %c0 = arith.constant 0 : index
    %c0_1 = arith.constant 0 : index
    %c0_2 = arith.constant 0 : index
    %3 = vector.load %arg2[%c0, %c0_1, %c0_2] : memref<1x4x256xf32, #tpu.memory_space<vmem>>, vector<1x4x256xf32>
    %4 = vector.shape_cast %3 : vector<1x4x256xf32> to vector<4x256xf32>
    %c0_3 = arith.constant 0 : index
    %c0_4 = arith.constant 0 : index
    %c0_5 = arith.constant 0 : index
    %5 = vector.load %arg3[%c0_3, %c0_4, %c0_5] : memref<1x1x256xi32, #tpu.memory_space<vmem>>, vector<1x1x256xi32>
    %6 = vector.shape_cast %5 : vector<1x1x256xi32> to vector<1x256xi32>
    %7 = tpu.iota {dimensions = array<i32: 1>} : vector<1x256xi32>
    %c256_i32 = arith.constant 256 : i32
    %8 = arith.muli %arg1, %c256_i32 : i32
    %9 = vector.broadcast %8 : i32 to vector<1x256xi32>
    %10 = arith.addi %7, %9 : vector<1x256xi32>
    %c256_i32_6 = arith.constant 256 : i32
    %11 = vector.broadcast %c256_i32_6 : i32 to vector<1x256xi32>
    %12 = arith.cmpi slt, %10, %11 : vector<1x256xi32>
    %cst = arith.constant 0.000000e+00 : f32
    %13 = vector.shape_cast %12 : vector<1x256xi1> to vector<1x256xi1>
    %14 = vector.broadcast %13 : vector<1x256xi1> to vector<4x256xi1>
    %15 = vector.broadcast %cst : f32 to vector<4x256xf32>
    %16 = arith.select %14, %4, %15 : vector<4x256xi1>, vector<4x256xf32>
    %cst_7 = arith.constant dense<0xFF800000> : vector<256xf32>
    %17 = vector.multi_reduction <maximumf>, %16, %cst_7 [0] : vector<4x256xf32> to vector<256xf32>
    %18 = vector.shape_cast %17 : vector<256xf32> to vector<1x256xf32>
    %19 = vector.broadcast %18 : vector<1x256xf32> to vector<4x256xf32>
    %20 = arith.subf %16, %19 : vector<4x256xf32>
    %21 = math.exp %20 : vector<4x256xf32>
    %cst_8 = arith.constant dense<0.000000e+00> : vector<256xf32>
    %22 = vector.multi_reduction <add>, %21, %cst_8 [0] : vector<4x256xf32> to vector<256xf32>
    %23 = vector.shape_cast %22 : vector<256xf32> to vector<1x256xf32>
    %24 = arith.extui %12 : vector<1x256xi1> to vector<1x256xi32>
    %25 = arith.sitofp %24 : vector<1x256xi32> to vector<1x256xf32>
    %26 = tpu.reciprocal %23 : vector<1x256xf32> -> vector<1x256xf32>
    %27 = arith.mulf %26, %25 : vector<1x256xf32>
    %28 = vector.broadcast %27 : vector<1x256xf32> to vector<4x256xf32>
    %29 = arith.mulf %21, %28 : vector<4x256xf32>
    %30 = tpu.iota {dimensions = array<i32: 0>} : vector<4x256xi32>
    %31 = vector.broadcast %6 : vector<1x256xi32> to vector<4x256xi32>
    %32 = arith.cmpi eq, %31, %30 : vector<4x256xi32>
    %33 = vector.broadcast %12 : vector<1x256xi1> to vector<4x256xi1>
    %34 = arith.andi %32, %33 : vector<4x256xi1>
    %35 = arith.extui %34 : vector<4x256xi1> to vector<4x256xi32>
    %36 = arith.sitofp %35 : vector<4x256xi32> to vector<4x256xf32>
    %c0_9 = arith.constant 0 : index
    %c0_10 = arith.constant 0 : index
    %c0_11 = arith.constant 0 : index
    %37 = vector.load %arg4[%c0_9, %c0_10, %c0_11] : memref<1x4x1xf32, #tpu.memory_space<vmem>>, vector<1x4x1xf32>
    %38 = arith.mulf %29, %36 : vector<4x256xf32>
    %cst_12 = arith.constant dense<0.000000e+00> : vector<4xf32>
    %39 = vector.multi_reduction <add>, %38, %cst_12 [1] : vector<4x256xf32> to vector<4xf32>
    %40 = vector.shape_cast %39 : vector<4xf32> to vector<4x1xf32>
    %41 = vector.shape_cast %40 : vector<4x1xf32> to vector<1x4x1xf32>
    %42 = arith.addf %37, %41 : vector<1x4x1xf32>
    %c0_13 = arith.constant 0 : index
    %c0_14 = arith.constant 0 : index
    %c0_15 = arith.constant 0 : index
    %43 = vector.load %arg4[%c0_13, %c0_14, %c0_15] : memref<1x4x1xf32, #tpu.memory_space<vmem>>, vector<1x4x1xf32>
    tpu.vector_store %arg4[%c0_13, %c0_14, %c0_15], %42 {strides = array<i32>} : memref<1x4x1xf32, #tpu.memory_space<vmem>>, vector<1x4x1xf32>,
    %c0_16 = arith.constant 0 : index
    %c0_17 = arith.constant 0 : index
    %c0_18 = arith.constant 0 : index
    %44 = vector.load %arg5[%c0_16, %c0_17, %c0_18] : memref<1x4x1xf32, #tpu.memory_space<vmem>>, vector<1x4x1xf32>
    %45 = arith.addf %29, %36 : vector<4x256xf32>
    %cst_19 = arith.constant dense<0.000000e+00> : vector<4xf32>
    %46 = vector.multi_reduction <add>, %45, %cst_19 [1] : vector<4x256xf32> to vector<4xf32>
    %47 = vector.shape_cast %46 : vector<4xf32> to vector<4x1xf32>
    %48 = vector.shape_cast %47 : vector<4x1xf32> to vector<1x4x1xf32>
    %49 = arith.addf %44, %48 : vector<1x4x1xf32>
    %c0_20 = arith.constant 0 : index
    %c0_21 = arith.constant 0 : index
    %c0_22 = arith.constant 0 : index
    %50 = vector.load %arg5[%c0_20, %c0_21, %c0_22] : memref<1x4x1xf32, #tpu.memory_space<vmem>>, vector<1x4x1xf32>
    tpu.vector_store %arg5[%c0_20, %c0_21, %c0_22], %49 {strides = array<i32>} : memref<1x4x1xf32, #tpu.memory_space<vmem>>, vector<1x4x1xf32>,
    return
  }
  func.func @transform_0(%arg0: i32, %arg1: i32) -> (i32, i32, i32) {
    %c0_i32 = arith.constant 0 : i32
    %c0_i32_0 = arith.constant 0 : i32
    return %arg0, %c0_i32, %arg1 : i32, i32, i32
  }
  func.func @transform_1(%arg0: i32, %arg1: i32) -> (i32, i32, i32) {
    %c0_i32 = arith.constant 0 : i32
    %c0_i32_0 = arith.constant 0 : i32
    return %arg0, %c0_i32, %arg1 : i32, i32, i32
  }
  func.func @transform_2(%arg0: i32, %arg1: i32) -> (i32, i32, i32) {
    %c0_i32 = arith.constant 0 : i32
    %c0_i32_0 = arith.constant 0 : i32
    %c0_i32_1 = arith.constant 0 : i32
    return %arg0, %c0_i32, %c0_i32_0 : i32, i32, i32
  }
  func.func @transform_3(%arg0: i32, %arg1: i32) -> (i32, i32, i32) {
    %c0_i32 = arith.constant 0 : i32
    %c0_i32_0 = arith.constant 0 : i32
    %c0_i32_1 = arith.constant 0 : i32
    return %arg0, %c0_i32, %c0_i32_0 : i32, i32, i32
  }
}

</mosaic_0001>

<bundles_post_ra>
// kernel: dice_loss.1
= control target key start
LH: loop header
LB: loop body
LE: loop exit
PB: predicated region body
PF: predicated region fallthrough
CT: control target
= control target key end

     0   :  { %s557_s12 = smov 0   ;;  %s559_s13 = smov 0   ;;  %s626_s0 = inlined_call_operand.vmem [shape: f32[2,4,256], index: 0, kind: input, shape index: {}]   ;;  %s627_s1 = inlined_call_operand.vmem [shape: s32[2,1,256], index: 1, kind: input, shape index: {}]   ;;  %s628_s2 = inlined_call_operand.vmem [shape: f32[2,4,1], index: 2, kind: output, shape index: {0}]   ;;  %s629_s3 = inlined_call_operand.vmem [shape: f32[2,4,1], index: 3, kind: output, shape index: {1}]  }
   0x1   :  { %s561_s14 = smov 0  }
   0x2 LB: > { %s26_s15 = sadd.s32 1, %s530_s13  ;;  %p467_p0 = scmp.ge.s32.totalorder %s534_s14, 1  ;;  %s534_s14 = sphi %s561_s14, %s14_s14   ;;  %s530_s13 = sphi %s559_s13, %s631_s13   ;;  %s526_s12 = sphi %s557_s12, %s630_s12  }
   0x3   : > { %p28_p1 = scmp.ge.s32.totalorder %s26_s15, 2  ;;  %p175_p2 = scmp.lt.s32.totalorder %s534_s14, 3 }
   0x5   : > { %s633_s15 = smov (%p28_p1, %s26_s15), 0  ;;  %p176_p3 = pnand %p467_p0, %p175_p2 }
   0x6   : > { %p215_p4 = scmp.lt.s32.totalorder (!%p176_p3), %s526_s12, 1  ;;  %vm268_vm0 = vcmask (!%p176_p3), 1043456   ;;  %vm245_vm1 = vcmask (!%p176_p3), 3072   ;;  %v536_v4 = vmov (!%p176_p3), 0.0   ;;  %v311_v28 = vlaneseq (!%p176_p3) }
   0x7   : > { %179 = sbr.rel (%p176_p3) target bundleno = 228 (0xe4), region = 28 }
   0x8   : > { %v312_v33 = vshrl.u32 (!%p176_p3), %v311_v28, 7 }
   0xa   : > { %v315_v38 = vsub.s32 (!%p176_p3), 0, %v312_v33  ;;  %v319_v41 = vsub.s32 (!%p176_p3), 1, %v312_v33 }
   0xe   : > { %s635_s12 = smov (!%p215_p4, %s526_s12), 1 }
   0xf   : > { %s477_s16 = sshll.u32 %s635_s12, 3  ;;  %s471_s20 = sshll.u32 %s635_s12, 2 }
  0x10   : > { %s222_s19 = scalar_lea.vmem %s626_s0, %s477_s16  ;;  %s588_s23 = scalar_lea.vmem %s628_s2, %s471_s20 }
  0x11   : > { %v248_v0 = vld [vmem:[%s222_s19] sm:$0xff]  ;;  %246 = vst.msk [vmem:[%s588_s23] sm:$0xf] %vm245_vm1, %v536_v4  ;;  %s470_s24 = sshll.u32 %s635_s12, 1  ;;  %s240_s30 = scalar_lea.vmem %s629_s3, %s471_s20 }
  0x12   : > { %v264_v1 = vcombine.high %v248_v0, %v248_v0  ;;  %v269_v2 = vsel %vm268_vm0, %v248_v0, -inf  ;;  %s231_s27 = scalar_lea.vmem %s627_s1, %s470_s24  ;;  %247 = vst.msk [vmem:[%s240_s30] sm:$0xf] %vm245_vm1, %v536_v4 }
  0x13   : > { %v270_v3 = vrot.slane %v269_v2, 4  ;;  %v249_v39 = vld [vmem:[%s231_s27] sm:$0x3] }
  0x14   : > { %v276_v5 = vsel %vm268_vm0, %v264_v1, -inf  ;;  %v316_v42 = vrot.slane %v249_v39, %v315_v38  ;;  %v320_v43 = vrot.slane %v249_v39, %v319_v41 }
  0x15   : > { %v271_v6 = vmax.f32 %v269_v2, %v270_v3  ;;  %v277_v7 = vrot.slane %v276_v5, 4 }
  0x16   : > { %vm321_vm2 = vcmp.eq.s32.totalorder %v316_v42, %v312_v33  ;;  %vm322_vm3 = vcmp.eq.s32.totalorder %v320_v43, %v312_v33 }
  0x17   : > { %v272_v8 = vrot.slane %v271_v6, 2  ;;  %v278_v9 = vmax.f32 %v276_v5, %v277_v7  ;;  %v473_v45 = vsel %vm321_vm2, 1.0, %v536_v4  ;;  %v474_v48 = vsel %vm322_vm3, 1.0, %v536_v4 }
  0x18   : > { %v329_v60 = vld [vmem:[%s588_s23] sm:$0xf] }
  0x19   : > { %v273_v10 = vmax.f32 %v271_v6, %v272_v8  ;;  %v279_v11 = vrot.slane %v278_v9, 2  ;;  %v340_v63 = vld [vmem:[%s240_s30] sm:$0xf] }
  0x1b   : > { %v274_v12 = vrot.slane %v273_v10, 1  ;;  %v280_v13 = vmax.f32 %v278_v9, %v279_v11 }
  0x1d   : > { %v275_v14 = vmax.f32 %v273_v10, %v274_v12  ;;  %v281_v15 = vrot.slane %v280_v13, 1 }
  0x1f   : > { %v282_v16 = vmax.f32 %v280_v13, %v281_v15  ;;  %v283_v17 = vsub.f32 %v248_v0, %v275_v14 }
  0x21   : > { %v284_v18 = vsub.f32 %v264_v1, %v282_v16  ;;  %v285_v19 = vmul.f32 1.442695, %v283_v17 }
  0x23   : > { %504 = vpow2.f32 %v285_v19  ;;  %v287_v20 = vmul.f32 1.442695, %v284_v18 }
  0x25   : > { %506 = vpow2.f32 %v287_v20 }
  0x2d   : > { %v505_v21 = vpop.eup %504 }
  0x2e   : > { %v289_v22 = vsel %vm268_vm0, %v505_v21, 0.0 }
  0x2f   : > { %v507_v23 = vpop.eup %506  ;;  %v290_v24 = vrot.slane %v289_v22, 4 }
  0x30   : > { %v296_v25 = vsel %vm268_vm0, %v507_v23, 0.0 }
  0x31   : > { %v291_v26 = vadd.f32 %v290_v24, %v289_v22  ;;  %v297_v27 = vrot.slane %v296_v25, 4 }
  0x33   : > { %v292_v29 = vrot.slane %v291_v26, 2  ;;  %v298_v30 = vadd.f32 %v297_v27, %v296_v25 }
  0x35   : > { %v293_v31 = vadd.f32 %v292_v29, %v291_v26  ;;  %v299_v32 = vrot.slane %v298_v30, 2 }
  0x37   : > { %v294_v34 = vrot.slane %v293_v31, 1  ;;  %v300_v35 = vadd.f32 %v299_v32, %v298_v30 }
  0x39   : > { %v295_v36 = vadd.f32 %v294_v34, %v293_v31  ;;  %v301_v37 = vrot.slane %v300_v35, 1 }
  0x3b   : > { %v302_v40 = vadd.f32 %v301_v37, %v300_v35  ;;  %508 = vrcp.f32 %v295_v36 }
  0x3d   : > { %510 = vrcp.f32 %v302_v40 }
  0x45   : > { %v509_v44 = vpop.eup %508 }
  0x46   : > { %v309_v46 = vmul.f32 %v509_v44, %v505_v21 }
  0x47   : > { %v511_v47 = vpop.eup %510 }
  0x48   : > { %v310_v49 = vmul.f32 %v511_v47, %v507_v23  ;;  %v330_v50 = vmul.f32 %v473_v45, %v309_v46  ;;  %v341_v51 = vadd.f32 %v473_v45, %v309_v46 }
  0x4a   : > { %v331_v52 = vmul.f32 %v474_v48, %v310_v49  ;;  %v332_v53 = vsel %vm268_vm0, %v330_v50, 0.0  ;;  %v342_v54 = vadd.f32 %v474_v48, %v310_v49  ;;  %v343_v56 = vsel %vm268_vm0, %v341_v51, 0.0 }
  0x4c   : > { %v333_v55 = vsel %vm268_vm0, %v331_v52, 0.0  ;;  %v344_v57 = vsel %vm268_vm0, %v342_v54, 0.0 }
  0x4d   : > { %v334_v58 = vadd.f32 %v333_v55, %v332_v53  ;;  %v345_v59 = vadd.f32 %v344_v57, %v343_v56 }
  0x4f   : > { %335 = vadd.xlane.f32.xlu0 %v334_v58 }
  0x53   : > { %346 = vadd.xlane.f32.xlu0 %v345_v59 }
  0xdc   : > { %v336_v61 = vpop.xlane.xlu0 %335 }
  0xdd   : > { %v337_v62 = vadd.f32 %v336_v61, %v329_v60 }
  0xdf   : > { %339 = vst.msk [vmem:[%s588_s23] sm:$0xf] %vm245_vm1, %v337_v62 }
  0xe0   : > { %v347_v0 = vpop.xlane.xlu0 %346 }
  0xe1   : > { %v348_v1 = vadd.f32 %v347_v0, %v340_v63 }
  0xe3   : > { %349 = vst.msk [vmem:[%s240_s30] sm:$0xf] %vm245_vm1, %v348_v1 }
  0xe4 PF: > { %s14_s14 = sadd.s32 1, %s534_s14   ;;  %s630_s12 = smov %s530_s13 }
  0xe5   : > { %p11_p5 = scmp.ge.s32.totalorder %s14_s14, 4   ;;  %s631_s13 = smov %s633_s15 }
  0xe7   :  { %13 = sbr.rel (!%p11_p5) target bundleno = 2 (0x2), region = 77 }

</bundles_post_ra>
